<compile_context>
chip_gen: v7x
topology: tpu7x:2x2x1
jax: 0.10.0
libtpu: 0.0.40
codegen_flags: <defaults>
</compile_context>

<pallas_src>
import math

import jax
import jax.numpy as jnp
from jax.experimental import pallas as pl
from jax.experimental.pallas import tpu as pltpu


def _cdiv(a, b):
    return -(-a // b)


def _fold_bn(gamma, beta, mean, var, eps=1e-5):
    scale = gamma / jnp.sqrt(var + eps)
    shift = beta - mean * scale
    return scale.astype(jnp.float32), shift.astype(jnp.float32)


def _choose_nb(n, L, c_in, c_out, mid):
    """Whole batch elements per slab.

    Sized by bytes (live f32 intermediates + double-buffered bf16 I/O blocks),
    not just lanes, so the kernel stays spill-free and inside VMEM on every
    TPU generation (v7x has only 64 MiB/TC).  Keeps slab = nb*L a multiple of
    128 lanes whenever the batch axis is tiled, and prefers an even number of
    slabs (>= 2) so both v7x TensorCores are fed by the "parallel" grid axis.
    Invariant: a slab always contains whole batch elements (the conv2 boundary
    masks and the SE pooling one-hot rely on it).
    TODO(synk): on single-TC v5e/v6e a larger lane target (1024-2048) would
    amortize per-step overhead a bit further.
    """
    per_lane = (3 * c_out + 4 * mid) * 4 + 2 * (c_in + c_out) * 2
    by_bytes = max(1, (8 << 20) // (per_lane * L))
    by_lanes = max(1, _cdiv(512, L))          # >=512 lanes -> full-width stores
    nb = max(1, min(n, by_lanes, by_bytes))

    step = 1
    if L % 128 != 0:                          # slab must stay lane-tile aligned
        step = 128 // math.gcd(L, 128)
        if nb < step or step > n:
            return n                          # single full-array slab: no constraint
        nb = (nb // step) * step

    def ns(b):
        return _cdiv(n, b)

    if ns(nb) < 2 and n > 1:                  # prefer >=2 slabs (pipeline / 2 TCs)
        cand = (_cdiv(n, 2) // step) * step
        if cand >= 1:
            nb = min(nb, cand)
    if ns(nb) > 1 and ns(nb) % 2 == 1:        # prefer an even slab count
        for cand in range(nb - step, 0, -step):
            if ns(cand) % 2 == 0:
                nb = cand
                break
    return max(nb, 1)


def _make_kernel(*, c_out, mid, nb, L, inv_L, per_batch_scale):
    f32, bf16 = jnp.float32, jnp.bfloat16
    slab = nb * L

    def kernel(x_ref, lmask_ref, rmask_ref, w01_ref, b01_ref, w2_ref, b2_ref,
               w3_ref, b3_ref, wse1_ref, bse1_ref, wse2_ref, bse2_ref,
               pool_ref, *rest):
        if per_batch_scale:
            (o_ref,) = rest
        else:
            expand_ref, o_ref = rest

        x = x_ref[...]                                           # (C_in, slab) bf16

        # ---- fused skip 1x1 + conv1 1x1 (BN scales folded, shared RHS x) ----
        t = jnp.dot(w01_ref[...], x, preferred_element_type=f32) + b01_ref[...]
        res = t[:c_out].astype(bf16)       # residual path: long-lived -> keep bf16
        h = jnp.maximum(t[c_out:], 0.0)    # conv1 + BN + ReLU, (mid, slab) f32

        # ---- conv2: k=3, stride=1, pad=1 as 3 matmul-accumulates (no scratch) ----
        lm = lmask_ref[...].astype(f32)    # zero at per-batch left edges
        rm = rmask_ref[...].astype(f32)    # zero at per-batch right edges
        h_l = (pltpu.roll(h, shift=1, axis=1) * lm).astype(bf16)          # h[l-1]
        h_c = h.astype(bf16)                                              # h[l]
        h_r = (pltpu.roll(h, shift=slab - 1, axis=1) * rm).astype(bf16)   # h[l+1]
        h2 = jnp.dot(w2_ref[0], h_l, preferred_element_type=f32)
        h2 = h2 + jnp.dot(w2_ref[1], h_c, preferred_element_type=f32)
        h2 = h2 + jnp.dot(w2_ref[2], h_r, preferred_element_type=f32)
        h2 = jnp.maximum(h2 + b2_ref[...], 0.0).astype(bf16)
        # dropout: identity in inference mode

        # ---- conv3: 1x1 conv + BN shift ----
        h3 = jnp.dot(w3_ref[...], h2, preferred_element_type=f32) + b3_ref[...]

        # ---- SE: per-batch avg pool (block-diag one-hot) -> MLP -> sigmoid ----
        pooled = jnp.dot(h3.astype(bf16), pool_ref[...],
                         preferred_element_type=f32) * inv_L              # (C_out, nb)
        s = jnp.maximum(
            jnp.dot(wse1_ref[...], pooled, preferred_element_type=f32) + bse1_ref[...],
            0.0)
        s = jax.nn.sigmoid(
            jnp.dot(wse2_ref[...], s, preferred_element_type=f32) + bse2_ref[...])

        # ---- SE scale, residual add, final ReLU ----
        if per_batch_scale:
            # static per-batch loop with lane-aligned L-wide slices (L % 128 == 0):
            # avoids the (C_out, slab) f32 `scale` temporary and the expand matmul.
            for b in range(nb):
                cols = slice(b * L, (b + 1) * L)
                o_ref[:, cols] = jnp.maximum(
                    h3[:, cols] * s[:, b:b + 1] + res[:, cols], 0.0
                ).astype(o_ref.dtype)
        else:
            scale = jnp.dot(s.astype(bf16), expand_ref[...],
                            preferred_element_type=f32)                   # (C_out, slab)
            o_ref[...] = jnp.maximum(h3 * scale + res, 0.0).astype(o_ref.dtype)

    return kernel


def residual_block_1d(x, params, *, nb=None):
    """x: (N, C_in, L) float32.  Returns (N, C_out, L) bfloat16.

    Each grid step processes `nb` whole batch elements as one lane-dense
    channel-major (C, nb*L) slab.  See the header for the precision contract.
    """
    N, C_in, L = x.shape
    C_out, mid = params["w3"].shape
    f32, bf16 = jnp.float32, jnp.bfloat16

    if nb is None:
        nb = _choose_nb(N, L, C_in, C_out, mid)
    n_pad = _cdiv(N, nb) * nb
    if n_pad != N:
        x = jnp.pad(x, ((0, n_pad - N), (0, 0), (0, 0)))
    slab = nb * L
    num_slabs = n_pad // nb

    # ---- lane-dense channel-major layout: (C_in, N*L), bf16 ----
    x2d = jnp.transpose(x, (1, 0, 2)).reshape(C_in, n_pad * L).astype(bf16)

    # ---- fold BN running stats; fold the scales into the conv weights ----
    s1, sh1 = _fold_bn(params["g1"], params["b1"], params["m1"], params["v1"])
    s2, sh2 = _fold_bn(params["g2"], params["b2"], params["m2"], params["v2"])
    s3, sh3 = _fold_bn(params["g3"], params["b3"], params["m3"], params["v3"])
    ssk, shsk = _fold_bn(params["g_sk"], params["b_sk"], params["m_sk"], params["v_sk"])

    # fused [skip ; conv1] weight / shift: slice boundary in-kernel is sublane
    # aligned when C_out % 8 == 0 (true for this block).
    w01 = jnp.concatenate([params["w_skip"] * ssk[:, None],
                           params["w1"] * s1[:, None]], axis=0).astype(bf16)
    b01 = jnp.concatenate([shsk, sh1], axis=0)[:, None].astype(f32)

    w2taps = jnp.transpose(params["w2"] * s2[:, None, None], (2, 0, 1)).astype(bf16)
    b2 = sh2[:, None].astype(f32)
    w3f = (params["w3"] * s3[:, None]).astype(bf16)
    b3 = sh3[:, None].astype(f32)

    wse1 = params["wse1"].astype(f32)
    bse1 = params["bse1"][:, None].astype(f32)
    wse2 = params["wse2"].astype(f32)
    bse2 = params["bse2"][:, None].astype(f32)

    # ---- per-batch boundary masks (zero-pad for k=3) and SE pooling one-hot ----
    # (each slab holds whole batch elements, so the masked wrap columns are exact)
    col = jnp.arange(slab)
    lmask = (col % L != 0).astype(bf16)[None, :]
    rmask = (col % L != L - 1).astype(bf16)[None, :]
    onehot = (col[:, None] // L == jnp.arange(nb)[None, :])
    pool = onehot.astype(bf16)                 # (slab, nb); scaled by 1/L in-kernel

    per_batch_scale = (L % 128 == 0) and nb <= 16
    inputs = [x2d, lmask, rmask, w01, b01, w2taps, b2, w3f, b3,
              wse1, bse1, wse2, bse2, pool]
    if not per_batch_scale:
        inputs.append(jnp.transpose(onehot).astype(bf16))     # (nb, slab) expand

    in_specs = [pl.BlockSpec((C_in, slab), lambda i: (0, i))]
    for a in inputs[1:]:
        nd = a.ndim
        in_specs.append(pl.BlockSpec(a.shape, lambda i, _nd=nd: (0,) * _nd))
    out_specs = pl.BlockSpec((C_out, slab), lambda i: (0, i))

    # ---- advisory cost + a VMEM budget derived from actual block sizes ----
    se_ch = int(wse1.shape[0])
    macs = (C_out + mid) * C_in + 3 * mid * mid + mid * C_out + C_out
    const_bytes = sum(int(a.size) * a.dtype.itemsize for a in inputs[1:])
    cost = pl.CostEstimate(
        flops=int(2 * n_pad * L * macs + 8 * n_pad * L * C_out
                  + 4 * n_pad * se_ch * C_out),
        transcendentals=int(n_pad * C_out),
        bytes_accessed=int(const_bytes + n_pad * L * (C_in + C_out) * 2))
    vmem_need = (2 * (C_in + C_out) * slab * 2            # double-buffered bf16 I/O blocks
                 + 2 * const_bytes                        # replicated constants
                 + (3 * C_out + 4 * mid) * 4 * slab       # live intermediates
                 + (2 << 20))                             # compiler scratch headroom
    vmem_limit = None if vmem_need <= (32 << 20) else int(min(vmem_need, 96 << 20))

    out2d = pl.pallas_call(
        _make_kernel(c_out=C_out, mid=mid, nb=nb, L=L, inv_L=1.0 / L,
                     per_batch_scale=per_batch_scale),
        out_shape=jax.ShapeDtypeStruct((C_out, n_pad * L), bf16),
        grid=(num_slabs,),
        in_specs=in_specs,
        out_specs=out_specs,
        compiler_params=pltpu.CompilerParams(
            dimension_semantics=("parallel",),
            vmem_limit_bytes=vmem_limit),
        cost_estimate=cost,
    )(*inputs)

    out = out2d.reshape(C_out, n_pad, L).transpose(1, 0, 2)
    return out[:N]


def reference_forward(x, params, eps=1e-5):
    """Pure-JAX float32 reference reproducing the PyTorch forward (eval mode)."""
    def bn(h, g, b, m, v):
        return (h - m[None, :, None]) / jnp.sqrt(v[None, :, None] + eps) \
            * g[None, :, None] + b[None, :, None]

    res = jnp.einsum("oc,ncl->nol", params["w_skip"], x)
    res = bn(res, params["g_sk"], params["b_sk"], params["m_sk"], params["v_sk"])

    h = jnp.einsum("oc,ncl->nol", params["w1"], x)
    h = jax.nn.relu(bn(h, params["g1"], params["b1"], params["m1"], params["v1"]))

    h2 = jax.lax.conv_general_dilated(
        h, params["w2"], window_strides=(1,), padding=((1, 1),),
        dimension_numbers=("NCH", "OIH", "NCH"))
    h2 = jax.nn.relu(bn(h2, params["g2"], params["b2"], params["m2"], params["v2"]))

    h3 = jnp.einsum("om,nml->nol", params["w3"], h2)
    h3 = bn(h3, params["g3"], params["b3"], params["m3"], params["v3"])

    pooled = jnp.mean(h3, axis=2)                                    # (N, C_out)
    s = jax.nn.relu(jnp.einsum("so,no->ns", params["wse1"], pooled)
                    + params["bse1"][None, :])
    s = jax.nn.sigmoid(jnp.einsum("os,ns->no", params["wse2"], s)
                       + params["bse2"][None, :])
    h3 = h3 * s[:, :, None]

    return jax.nn.relu(h3 + res)


def make_params(key, in_channels, out_channels, kernel_size=3, expansion=4):
    mid = out_channels // expansion
    se = max(1, out_channels // 16)
    ks = jax.random.split(key, 24)

    def w(k, shape, scale=0.1):
        return (scale * jax.random.normal(k, shape)).astype(jnp.float32)

    def bn_params(k, c):
        k1, k2, k3, k4 = jax.random.split(k, 4)
        return (jax.random.uniform(k1, (c,), minval=0.5, maxval=1.5).astype(jnp.float32),
                w(k2, (c,)),
                w(k3, (c,)),
                jax.random.uniform(k4, (c,), minval=0.5, maxval=1.5).astype(jnp.float32))

    g1, b1, m1, v1 = bn_params(ks[0], mid)
    g2, b2, m2, v2 = bn_params(ks[1], mid)
    g3, b3, m3, v3 = bn_params(ks[2], out_channels)
    g_sk, b_sk, m_sk, v_sk = bn_params(ks[3], out_channels)

    return dict(
        w1=w(ks[4], (mid, in_channels)),                 # Conv1d(in, mid, 1)
        w2=w(ks[5], (mid, mid, kernel_size)),            # Conv1d(mid, mid, 3)
        w3=w(ks[6], (out_channels, mid)),                # Conv1d(mid, out, 1)
        w_skip=w(ks[7], (out_channels, in_channels)),    # skip Conv1d(in, out, 1)
        wse1=w(ks[8], (se, out_channels)), bse1=w(ks[9], (se,)),
        wse2=w(ks[10], (out_channels, se)), bse2=w(ks[11], (out_channels,)),
        g1=g1, b1=b1, m1=m1, v1=v1,
        g2=g2, b2=b2, m2=m2, v2=v2,
        g3=g3, b3=b3, m3=m3, v3=v3,
        g_sk=g_sk, b_sk=b_sk, m_sk=m_sk, v_sk=v_sk,
    )


if __name__ == "__main__":
    key = jax.random.PRNGKey(0)
    k_x, k_p = jax.random.split(key)

    N, C_in, C_out, L = 8, 8, 16, 128
    x = jax.random.normal(k_x, (N, C_in, L), dtype=jnp.float32)
    params = make_params(k_p, C_in, C_out)

    out = jax.block_until_ready(residual_block_1d(x, params))
    ref = reference_forward(x, params)

    assert out.shape == (N, C_out, L)
    out32 = out.astype(jnp.float32)
    assert jnp.allclose(out32, ref, rtol=5e-2, atol=5e-2), \
        f"max err {jnp.max(jnp.abs(out32 - ref))}"

    print("KERNEL_OK")
</pallas_src>

<mosaic_0001>
module attributes {stable_mosaic.version = 11 : i64} {
  func.func @kernel(%arg0: i32, %arg1: memref<8x512xbf16, #tpu.memory_space<vmem>>, %arg2: memref<1x512xbf16, #tpu.memory_space<vmem>>, %arg3: memref<1x512xbf16, #tpu.memory_space<vmem>>, %arg4: memref<20x8xbf16, #tpu.memory_space<vmem>>, %arg5: memref<20x1xf32, #tpu.memory_space<vmem>>, %arg6: memref<3x4x4xbf16, #tpu.memory_space<vmem>>, %arg7: memref<4x1xf32, #tpu.memory_space<vmem>>, %arg8: memref<16x4xbf16, #tpu.memory_space<vmem>>, %arg9: memref<16x1xf32, #tpu.memory_space<vmem>>, %arg10: memref<1x16xf32, #tpu.memory_space<vmem>>, %arg11: memref<1x1xf32, #tpu.memory_space<vmem>>, %arg12: memref<16x1xf32, #tpu.memory_space<vmem>>, %arg13: memref<16x1xf32, #tpu.memory_space<vmem>>, %arg14: memref<512x4xbf16, #tpu.memory_space<vmem>>, %arg15: memref<16x512xbf16, #tpu.memory_space<vmem>>) attributes {dimension_semantics = [#tpu.dimension_semantics<parallel>], iteration_bounds = array<i64: 2>, scalar_prefetch = 0 : i64, scratch_operands = 0 : i64, tpu.core_type = #tpu.core_type<tc>, window_params = [{transform_indices = @transform_0, window_bounds = array<i64: 8, 512>}, {pipeline_mode = #tpu.pipeline_mode<synchronous>, transform_indices = @transform_1, window_bounds = array<i64: 1, 512>}, {pipeline_mode = #tpu.pipeline_mode<synchronous>, transform_indices = @transform_2, window_bounds = array<i64: 1, 512>}, {pipeline_mode = #tpu.pipeline_mode<synchronous>, transform_indices = @transform_3, window_bounds = array<i64: 20, 8>}, {pipeline_mode = #tpu.pipeline_mode<synchronous>, transform_indices = @transform_4, window_bounds = array<i64: 20, 1>}, {pipeline_mode = #tpu.pipeline_mode<synchronous>, transform_indices = @transform_5, window_bounds = array<i64: 3, 4, 4>}, {pipeline_mode = #tpu.pipeline_mode<synchronous>, transform_indices = @transform_6, window_bounds = array<i64: 4, 1>}, {pipeline_mode = #tpu.pipeline_mode<synchronous>, transform_indices = @transform_7, window_bounds = array<i64: 16, 4>}, {pipeline_mode = #tpu.pipeline_mode<synchronous>, transform_indices = @transform_8, window_bounds = array<i64: 16, 1>}, {pipeline_mode = #tpu.pipeline_mode<synchronous>, transform_indices = @transform_9, window_bounds = array<i64: 1, 16>}, {pipeline_mode = #tpu.pipeline_mode<synchronous>, transform_indices = @transform_10, window_bounds = array<i64: 1, 1>}, {pipeline_mode = #tpu.pipeline_mode<synchronous>, transform_indices = @transform_11, window_bounds = array<i64: 16, 1>}, {pipeline_mode = #tpu.pipeline_mode<synchronous>, transform_indices = @transform_12, window_bounds = array<i64: 16, 1>}, {pipeline_mode = #tpu.pipeline_mode<synchronous>, transform_indices = @transform_13, window_bounds = array<i64: 512, 4>}, {transform_indices = @transform_14, window_bounds = array<i64: 16, 512>}]} {
    %c0 = arith.constant 0 : index
    %c0_0 = arith.constant 0 : index
    %0 = vector.load %arg1[%c0, %c0_0] : memref<8x512xbf16, #tpu.memory_space<vmem>>, vector<8x512xbf16>
    %c0_1 = arith.constant 0 : index
    %c0_2 = arith.constant 0 : index
    %1 = vector.load %arg4[%c0_1, %c0_2] : memref<20x8xbf16, #tpu.memory_space<vmem>>, vector<20x8xbf16>
    %cst = arith.constant dense<0.000000e+00> : vector<20x512xf32>
    %2 = tpu.matmul %1, %0, %cst {dimension_numbers = #tpu.dot_dimension_numbers<[1], [0], [0], [1], [0, 0, 1, 1], [], []>} : vector<20x8xbf16>, vector<8x512xbf16>, vector<20x512xf32> -> vector<20x512xf32>
    %c0_3 = arith.constant 0 : index
    %c0_4 = arith.constant 0 : index
    %3 = vector.load %arg5[%c0_3, %c0_4] : memref<20x1xf32, #tpu.memory_space<vmem>>, vector<20x1xf32>
    %4 = vector.broadcast %3 : vector<20x1xf32> to vector<20x512xf32>
    %5 = arith.addf %2, %4 : vector<20x512xf32>
    %6 = vector.extract_strided_slice %5 {offsets = [0, 0], sizes = [16, 512], strides = [1, 1]} : vector<20x512xf32> to vector<16x512xf32>
    %7 = arith.truncf %6 : vector<16x512xf32> to vector<16x512xbf16>
    %8 = vector.extract_strided_slice %5 {offsets = [16, 0], sizes = [4, 512], strides = [1, 1]} : vector<20x512xf32> to vector<4x512xf32>
    %cst_5 = arith.constant 0.000000e+00 : f32
    %9 = vector.broadcast %cst_5 : f32 to vector<4x512xf32>
    %10 = arith.maximumf %8, %9 : vector<4x512xf32>
    %c0_6 = arith.constant 0 : index
    %c0_7 = arith.constant 0 : index
    %11 = vector.load %arg2[%c0_6, %c0_7] : memref<1x512xbf16, #tpu.memory_space<vmem>>, vector<1x512xbf16>
    %12 = arith.extf %11 : vector<1x512xbf16> to vector<1x512xf32>
    %c0_8 = arith.constant 0 : index
    %c0_9 = arith.constant 0 : index
    %13 = vector.load %arg3[%c0_8, %c0_9] : memref<1x512xbf16, #tpu.memory_space<vmem>>, vector<1x512xbf16>
    %14 = arith.extf %13 : vector<1x512xbf16> to vector<1x512xf32>
    %c1_i32 = arith.constant 1 : i32
    %15 = tpu.dynamic_rotate %10 by %c1_i32 dim 1 : vector<4x512xf32>, i32 -> vector<4x512xf32>
    %16 = vector.broadcast %12 : vector<1x512xf32> to vector<4x512xf32>
    %17 = arith.mulf %15, %16 : vector<4x512xf32>
    %18 = arith.truncf %17 : vector<4x512xf32> to vector<4x512xbf16>
    %19 = arith.truncf %10 : vector<4x512xf32> to vector<4x512xbf16>
    %c511_i32 = arith.constant 511 : i32
    %20 = tpu.dynamic_rotate %10 by %c511_i32 dim 1 : vector<4x512xf32>, i32 -> vector<4x512xf32>
    %21 = vector.broadcast %14 : vector<1x512xf32> to vector<4x512xf32>
    %22 = arith.mulf %20, %21 : vector<4x512xf32>
    %23 = arith.truncf %22 : vector<4x512xf32> to vector<4x512xbf16>
    %c0_10 = arith.constant 0 : index
    %c0_11 = arith.constant 0 : index
    %c0_12 = arith.constant 0 : index
    %24 = vector.load %arg6[%c0_10, %c0_11, %c0_12] : memref<3x4x4xbf16, #tpu.memory_space<vmem>>, vector<1x4x4xbf16>
    %25 = vector.shape_cast %24 : vector<1x4x4xbf16> to vector<4x4xbf16>
    %cst_13 = arith.constant dense<0.000000e+00> : vector<4x512xf32>
    %26 = tpu.matmul %25, %18, %cst_13 {dimension_numbers = #tpu.dot_dimension_numbers<[1], [0], [0], [1], [0, 0, 1, 1], [], []>} : vector<4x4xbf16>, vector<4x512xbf16>, vector<4x512xf32> -> vector<4x512xf32>
    %c1 = arith.constant 1 : index
    %c0_14 = arith.constant 0 : index
    %c0_15 = arith.constant 0 : index
    %27 = vector.load %arg6[%c1, %c0_14, %c0_15] : memref<3x4x4xbf16, #tpu.memory_space<vmem>>, vector<1x4x4xbf16>
    %28 = vector.shape_cast %27 : vector<1x4x4xbf16> to vector<4x4xbf16>
    %cst_16 = arith.constant dense<0.000000e+00> : vector<4x512xf32>
    %29 = tpu.matmul %28, %19, %cst_16 {dimension_numbers = #tpu.dot_dimension_numbers<[1], [0], [0], [1], [0, 0, 1, 1], [], []>} : vector<4x4xbf16>, vector<4x512xbf16>, vector<4x512xf32> -> vector<4x512xf32>
    %30 = arith.addf %26, %29 : vector<4x512xf32>
    %c2 = arith.constant 2 : index
    %c0_17 = arith.constant 0 : index
    %c0_18 = arith.constant 0 : index
    %31 = vector.load %arg6[%c2, %c0_17, %c0_18] : memref<3x4x4xbf16, #tpu.memory_space<vmem>>, vector<1x4x4xbf16>
    %32 = vector.shape_cast %31 : vector<1x4x4xbf16> to vector<4x4xbf16>
    %cst_19 = arith.constant dense<0.000000e+00> : vector<4x512xf32>
    %33 = tpu.matmul %32, %23, %cst_19 {dimension_numbers = #tpu.dot_dimension_numbers<[1], [0], [0], [1], [0, 0, 1, 1], [], []>} : vector<4x4xbf16>, vector<4x512xbf16>, vector<4x512xf32> -> vector<4x512xf32>
    %34 = arith.addf %30, %33 : vector<4x512xf32>
    %c0_20 = arith.constant 0 : index
    %c0_21 = arith.constant 0 : index
    %35 = vector.load %arg7[%c0_20, %c0_21] : memref<4x1xf32, #tpu.memory_space<vmem>>, vector<4x1xf32>
    %36 = vector.broadcast %35 : vector<4x1xf32> to vector<4x512xf32>
    %37 = arith.addf %34, %36 : vector<4x512xf32>
    %cst_22 = arith.constant 0.000000e+00 : f32
    %38 = vector.broadcast %cst_22 : f32 to vector<4x512xf32>
    %39 = arith.maximumf %37, %38 : vector<4x512xf32>
    %40 = arith.truncf %39 : vector<4x512xf32> to vector<4x512xbf16>
    %c0_23 = arith.constant 0 : index
    %c0_24 = arith.constant 0 : index
    %41 = vector.load %arg8[%c0_23, %c0_24] : memref<16x4xbf16, #tpu.memory_space<vmem>>, vector<16x4xbf16>
    %cst_25 = arith.constant dense<0.000000e+00> : vector<16x512xf32>
    %42 = tpu.matmul %41, %40, %cst_25 {dimension_numbers = #tpu.dot_dimension_numbers<[1], [0], [0], [1], [0, 0, 1, 1], [], []>} : vector<16x4xbf16>, vector<4x512xbf16>, vector<16x512xf32> -> vector<16x512xf32>
    %c0_26 = arith.constant 0 : index
    %c0_27 = arith.constant 0 : index
    %43 = vector.load %arg9[%c0_26, %c0_27] : memref<16x1xf32, #tpu.memory_space<vmem>>, vector<16x1xf32>
    %44 = vector.broadcast %43 : vector<16x1xf32> to vector<16x512xf32>
    %45 = arith.addf %42, %44 : vector<16x512xf32>
    %46 = arith.truncf %45 : vector<16x512xf32> to vector<16x512xbf16>
    %c0_28 = arith.constant 0 : index
    %c0_29 = arith.constant 0 : index
    %47 = vector.load %arg14[%c0_28, %c0_29] : memref<512x4xbf16, #tpu.memory_space<vmem>>, vector<512x4xbf16>
    %cst_30 = arith.constant dense<0.000000e+00> : vector<16x4xf32>
    %48 = tpu.matmul %46, %47, %cst_30 {dimension_numbers = #tpu.dot_dimension_numbers<[1], [0], [0], [1], [0, 0, 1, 1], [], []>} : vector<16x512xbf16>, vector<512x4xbf16>, vector<16x4xf32> -> vector<16x4xf32>
    %cst_31 = arith.constant 7.812500e-03 : f32
    %49 = vector.broadcast %cst_31 : f32 to vector<16x4xf32>
    %50 = arith.mulf %48, %49 : vector<16x4xf32>
    %c0_32 = arith.constant 0 : index
    %c0_33 = arith.constant 0 : index
    %51 = vector.load %arg10[%c0_32, %c0_33] : memref<1x16xf32, #tpu.memory_space<vmem>>, vector<1x16xf32>
    %cst_34 = arith.constant dense<0.000000e+00> : vector<1x4xf32>
    %52 = tpu.matmul %51, %50, %cst_34 {dimension_numbers = #tpu.dot_dimension_numbers<[1], [0], [0], [1], [0, 0, 1, 1], [], []>} : vector<1x16xf32>, vector<16x4xf32>, vector<1x4xf32> -> vector<1x4xf32>
    %c0_35 = arith.constant 0 : index
    %c0_36 = arith.constant 0 : index
    %53 = vector.load %arg11[%c0_35, %c0_36] : memref<1x1xf32, #tpu.memory_space<vmem>>, vector<1x1xf32>
    %54 = vector.broadcast %53 : vector<1x1xf32> to vector<1x4xf32>
    %55 = arith.addf %52, %54 : vector<1x4xf32>
    %cst_37 = arith.constant 0.000000e+00 : f32
    %56 = vector.broadcast %cst_37 : f32 to vector<1x4xf32>
    %57 = arith.maximumf %55, %56 : vector<1x4xf32>
    %c0_38 = arith.constant 0 : index
    %c0_39 = arith.constant 0 : index
    %58 = vector.load %arg12[%c0_38, %c0_39] : memref<16x1xf32, #tpu.memory_space<vmem>>, vector<16x1xf32>
    %cst_40 = arith.constant dense<0.000000e+00> : vector<16x4xf32>
    %59 = tpu.matmul %58, %57, %cst_40 {dimension_numbers = #tpu.dot_dimension_numbers<[1], [0], [0], [1], [0, 0, 1, 1], [], []>} : vector<16x1xf32>, vector<1x4xf32>, vector<16x4xf32> -> vector<16x4xf32>
    %c0_41 = arith.constant 0 : index
    %c0_42 = arith.constant 0 : index
    %60 = vector.load %arg13[%c0_41, %c0_42] : memref<16x1xf32, #tpu.memory_space<vmem>>, vector<16x1xf32>
    %61 = vector.broadcast %60 : vector<16x1xf32> to vector<16x4xf32>
    %62 = arith.addf %59, %61 : vector<16x4xf32>
    %63 = arith.negf %62 : vector<16x4xf32>
    %64 = math.exp %63 : vector<16x4xf32>
    %cst_43 = arith.constant 1.000000e+00 : f32
    %65 = vector.broadcast %cst_43 : f32 to vector<16x4xf32>
    %66 = arith.addf %65, %64 : vector<16x4xf32>
    %67 = arith.divf %65, %66 : vector<16x4xf32>
    %68 = vector.extract_strided_slice %45 {offsets = [0, 0], sizes = [16, 128], strides = [1, 1]} : vector<16x512xf32> to vector<16x128xf32>
    %69 = vector.extract_strided_slice %67 {offsets = [0, 0], sizes = [16, 1], strides = [1, 1]} : vector<16x4xf32> to vector<16x1xf32>
    %70 = vector.broadcast %69 : vector<16x1xf32> to vector<16x128xf32>
    %71 = arith.mulf %68, %70 : vector<16x128xf32>
    %72 = vector.extract_strided_slice %7 {offsets = [0, 0], sizes = [16, 128], strides = [1, 1]} : vector<16x512xbf16> to vector<16x128xbf16>
    %73 = arith.extf %72 : vector<16x128xbf16> to vector<16x128xf32>
    %74 = arith.addf %71, %73 : vector<16x128xf32>
    %cst_44 = arith.constant 0.000000e+00 : f32
    %75 = vector.broadcast %cst_44 : f32 to vector<16x128xf32>
    %76 = arith.maximumf %74, %75 : vector<16x128xf32>
    %77 = arith.truncf %76 : vector<16x128xf32> to vector<16x128xbf16>
    %c0_45 = arith.constant 0 : index
    %c0_46 = arith.constant 0 : index
    %78 = vector.load %arg15[%c0_45, %c0_46] : memref<16x512xbf16, #tpu.memory_space<vmem>>, vector<16x128xbf16>
    tpu.vector_store %arg15[%c0_45, %c0_46], %77 {strides = array<i32>} : memref<16x512xbf16, #tpu.memory_space<vmem>>, vector<16x128xbf16>,
    %79 = vector.extract_strided_slice %45 {offsets = [0, 128], sizes = [16, 128], strides = [1, 1]} : vector<16x512xf32> to vector<16x128xf32>
    %80 = vector.extract_strided_slice %67 {offsets = [0, 1], sizes = [16, 1], strides = [1, 1]} : vector<16x4xf32> to vector<16x1xf32>
    %81 = vector.broadcast %80 : vector<16x1xf32> to vector<16x128xf32>
    %82 = arith.mulf %79, %81 : vector<16x128xf32>
    %83 = vector.extract_strided_slice %7 {offsets = [0, 128], sizes = [16, 128], strides = [1, 1]} : vector<16x512xbf16> to vector<16x128xbf16>
    %84 = arith.extf %83 : vector<16x128xbf16> to vector<16x128xf32>
    %85 = arith.addf %82, %84 : vector<16x128xf32>
    %cst_47 = arith.constant 0.000000e+00 : f32
    %86 = vector.broadcast %cst_47 : f32 to vector<16x128xf32>
    %87 = arith.maximumf %85, %86 : vector<16x128xf32>
    %88 = arith.truncf %87 : vector<16x128xf32> to vector<16x128xbf16>
    %c0_48 = arith.constant 0 : index
    %c128 = arith.constant 128 : index
    %89 = vector.load %arg15[%c0_48, %c128] : memref<16x512xbf16, #tpu.memory_space<vmem>>, vector<16x128xbf16>
    tpu.vector_store %arg15[%c0_48, %c128], %88 {strides = array<i32>} : memref<16x512xbf16, #tpu.memory_space<vmem>>, vector<16x128xbf16>,
    %90 = vector.extract_strided_slice %45 {offsets = [0, 256], sizes = [16, 128], strides = [1, 1]} : vector<16x512xf32> to vector<16x128xf32>
    %91 = vector.extract_strided_slice %67 {offsets = [0, 2], sizes = [16, 1], strides = [1, 1]} : vector<16x4xf32> to vector<16x1xf32>
    %92 = vector.broadcast %91 : vector<16x1xf32> to vector<16x128xf32>
    %93 = arith.mulf %90, %92 : vector<16x128xf32>
    %94 = vector.extract_strided_slice %7 {offsets = [0, 256], sizes = [16, 128], strides = [1, 1]} : vector<16x512xbf16> to vector<16x128xbf16>
    %95 = arith.extf %94 : vector<16x128xbf16> to vector<16x128xf32>
    %96 = arith.addf %93, %95 : vector<16x128xf32>
    %cst_49 = arith.constant 0.000000e+00 : f32
    %97 = vector.broadcast %cst_49 : f32 to vector<16x128xf32>
    %98 = arith.maximumf %96, %97 : vector<16x128xf32>
    %99 = arith.truncf %98 : vector<16x128xf32> to vector<16x128xbf16>
    %c0_50 = arith.constant 0 : index
    %c256 = arith.constant 256 : index
    %100 = vector.load %arg15[%c0_50, %c256] : memref<16x512xbf16, #tpu.memory_space<vmem>>, vector<16x128xbf16>
    tpu.vector_store %arg15[%c0_50, %c256], %99 {strides = array<i32>} : memref<16x512xbf16, #tpu.memory_space<vmem>>, vector<16x128xbf16>,
    %101 = vector.extract_strided_slice %45 {offsets = [0, 384], sizes = [16, 128], strides = [1, 1]} : vector<16x512xf32> to vector<16x128xf32>
    %102 = vector.extract_strided_slice %67 {offsets = [0, 3], sizes = [16, 1], strides = [1, 1]} : vector<16x4xf32> to vector<16x1xf32>
    %103 = vector.broadcast %102 : vector<16x1xf32> to vector<16x128xf32>
    %104 = arith.mulf %101, %103 : vector<16x128xf32>
    %105 = vector.extract_strided_slice %7 {offsets = [0, 384], sizes = [16, 128], strides = [1, 1]} : vector<16x512xbf16> to vector<16x128xbf16>
    %106 = arith.extf %105 : vector<16x128xbf16> to vector<16x128xf32>
    %107 = arith.addf %104, %106 : vector<16x128xf32>
    %cst_51 = arith.constant 0.000000e+00 : f32
    %108 = vector.broadcast %cst_51 : f32 to vector<16x128xf32>
    %109 = arith.maximumf %107, %108 : vector<16x128xf32>
    %110 = arith.truncf %109 : vector<16x128xf32> to vector<16x128xbf16>
    %c0_52 = arith.constant 0 : index
    %c384 = arith.constant 384 : index
    %111 = vector.load %arg15[%c0_52, %c384] : memref<16x512xbf16, #tpu.memory_space<vmem>>, vector<16x128xbf16>
    tpu.vector_store %arg15[%c0_52, %c384], %110 {strides = array<i32>} : memref<16x512xbf16, #tpu.memory_space<vmem>>, vector<16x128xbf16>,
    return
  }
  func.func @transform_0(%arg0: i32) -> (i32, i32) {
    %c0_i32 = arith.constant 0 : i32
    %c0_i32_0 = arith.constant 0 : i32
    return %c0_i32, %arg0 : i32, i32
  }
  func.func @transform_1(%arg0: i32) -> (i32, i32) {
    %c0_i32 = arith.constant 0 : i32
    %c0_i32_0 = arith.constant 0 : i32
    %c0_i32_1 = arith.constant 0 : i32
    return %c0_i32, %c0_i32_0 : i32, i32
  }
  func.func @transform_2(%arg0: i32) -> (i32, i32) {
    %c0_i32 = arith.constant 0 : i32
    %c0_i32_0 = arith.constant 0 : i32
    %c0_i32_1 = arith.constant 0 : i32
    return %c0_i32, %c0_i32_0 : i32, i32
  }
  func.func @transform_3(%arg0: i32) -> (i32, i32) {
    %c0_i32 = arith.constant 0 : i32
    %c0_i32_0 = arith.constant 0 : i32
    %c0_i32_1 = arith.constant 0 : i32
    return %c0_i32, %c0_i32_0 : i32, i32
  }
  func.func @transform_4(%arg0: i32) -> (i32, i32) {
    %c0_i32 = arith.constant 0 : i32
    %c0_i32_0 = arith.constant 0 : i32
    %c0_i32_1 = arith.constant 0 : i32
    return %c0_i32, %c0_i32_0 : i32, i32
  }
  func.func @transform_5(%arg0: i32) -> (i32, i32, i32) {
    %c0_i32 = arith.constant 0 : i32
    %c0_i32_0 = arith.constant 0 : i32
    %c0_i32_1 = arith.constant 0 : i32
    %c0_i32_2 = arith.constant 0 : i32
    return %c0_i32, %c0_i32_0, %c0_i32_1 : i32, i32, i32
  }
  func.func @transform_6(%arg0: i32) -> (i32, i32) {
    %c0_i32 = arith.constant 0 : i32
    %c0_i32_0 = arith.constant 0 : i32
    %c0_i32_1 = arith.constant 0 : i32
    return %c0_i32, %c0_i32_0 : i32, i32
  }
  func.func @transform_7(%arg0: i32) -> (i32, i32) {
    %c0_i32 = arith.constant 0 : i32
    %c0_i32_0 = arith.constant 0 : i32
    %c0_i32_1 = arith.constant 0 : i32
    return %c0_i32, %c0_i32_0 : i32, i32
  }
  func.func @transform_8(%arg0: i32) -> (i32, i32) {
    %c0_i32 = arith.constant 0 : i32
    %c0_i32_0 = arith.constant 0 : i32
    %c0_i32_1 = arith.constant 0 : i32
    return %c0_i32, %c0_i32_0 : i32, i32
  }
  func.func @transform_9(%arg0: i32) -> (i32, i32) {
    %c0_i32 = arith.constant 0 : i32
    %c0_i32_0 = arith.constant 0 : i32
    %c0_i32_1 = arith.constant 0 : i32
    return %c0_i32, %c0_i32_0 : i32, i32
  }
  func.func @transform_10(%arg0: i32) -> (i32, i32) {
    %c0_i32 = arith.constant 0 : i32
    %c0_i32_0 = arith.constant 0 : i32
    %c0_i32_1 = arith.constant 0 : i32
    return %c0_i32, %c0_i32_0 : i32, i32
  }
  func.func @transform_11(%arg0: i32) -> (i32, i32) {
    %c0_i32 = arith.constant 0 : i32
    %c0_i32_0 = arith.constant 0 : i32
    %c0_i32_1 = arith.constant 0 : i32
    return %c0_i32, %c0_i32_0 : i32, i32
  }
  func.func @transform_12(%arg0: i32) -> (i32, i32) {
    %c0_i32 = arith.constant 0 : i32
    %c0_i32_0 = arith.constant 0 : i32
    %c0_i32_1 = arith.constant 0 : i32
    return %c0_i32, %c0_i32_0 : i32, i32
  }
  func.func @transform_13(%arg0: i32) -> (i32, i32) {
    %c0_i32 = arith.constant 0 : i32
    %c0_i32_0 = arith.constant 0 : i32
    %c0_i32_1 = arith.constant 0 : i32
    return %c0_i32, %c0_i32_0 : i32, i32
  }
  func.func @transform_14(%arg0: i32) -> (i32, i32) {
    %c0_i32 = arith.constant 0 : i32
    %c0_i32_0 = arith.constant 0 : i32
    return %c0_i32, %arg0 : i32, i32
  }
}

</mosaic_0001>

<bundles_post_ra>
// kernel: tpu_custom_call.1
= control target key start
LH: loop header
LB: loop body
LE: loop exit
PB: predicated region body
PF: predicated region fallthrough
CT: control target
= control target key end

     0   :  { %s2781_s0 = inlined_call_operand.vmem [shape: bf16[8,1024], index: 0, kind: input, shape index: {}]   ;;  %s2782_s1 = inlined_call_operand.vmem [shape: bf16[1,512], index: 1, kind: input, shape index: {}]   ;;  %s2783_s2 = inlined_call_operand.vmem [shape: bf16[1,512], index: 2, kind: input, shape index: {}]   ;;  %s2784_s3 = inlined_call_operand.vmem [shape: bf16[20,8], index: 3, kind: input, shape index: {}]   ;;  %s2785_s4 = inlined_call_operand.vmem [shape: f32[20,1], index: 4, kind: input, shape index: {}]   ;;  %s2786_s5 = inlined_call_operand.vmem [shape: bf16[3,4,4], index: 5, kind: input, shape index: {}]   ;;  %s2787_s6 = inlined_call_operand.vmem [shape: f32[4,1], index: 6, kind: input, shape index: {}]   ;;  %s2788_s7 = inlined_call_operand.vmem [shape: bf16[16,4], index: 7, kind: input, shape index: {}]   ;;  %s2789_s8 = inlined_call_operand.vmem [shape: f32[16,1], index: 8, kind: input, shape index: {}]   ;;  %s2790_s9 = inlined_call_operand.vmem [shape: f32[1,16], index: 9, kind: input, shape index: {}]   ;;  %s2791_s10 = inlined_call_operand.<no memory space> [shape: f32[1,1], index: 10, kind: input, shape index: {}]   ;;  %s2792_s11 = inlined_call_operand.vmem [shape: f32[16,1], index: 11, kind: input, shape index: {}]   ;;  %s2793_s12 = inlined_call_operand.vmem [shape: f32[16,1], index: 12, kind: input, shape index: {}]   ;;  %s2794_s13 = inlined_call_operand.vmem [shape: bf16[512,4], index: 13, kind: input, shape index: {}]   ;;  %s2795_s14 = inlined_call_operand.hbm [shape: bf16[16,1024], index: 14, kind: output, shape index: {}]  }
   0x1   :  { %2796 = sst [smem:[#allocation6_spill]] %s2781_s0  ;;  %v19_v0 = vstv %s2791_s10 }
   0x2   :  { %2797 = sst [smem:[#allocation7_spill]] %s2782_s1  ;;  %20 = vst [vmem:[#allocation2] sm:$0x1] %v19_v0 }
   0x3   :  { %2798 = sst [smem:[#allocation8_spill]] %s2783_s2 }
   0x4   :  { %21 = vsyncpa [#allocation4], 0 }
   0x5   :  { %23 = vsyncpa [#allocation4 + $0x1], 0  ;;  %s2358_s15 = smov 0   ;;  %s2360_s16 = smov 0  }
   0x6   :  { %s2362_s17 = smov 0   ;;  %s2364_s18 = smov 0  }
   0x7 LB: > { %s2379_s10 = sadd.s32 4294967295, %s2265_s18   ;;  %s1933_s19 = sadd.s32 4294967294, %s2265_s18   ;;  %s2265_s18 = sphi %s2364_s18, %s2807_s18   ;;  %s2261_s17 = sphi %s2362_s17, %s2806_s17   ;;  %s2257_s16 = sphi %s2360_s16, %s2805_s16   ;;  %s2253_s15 = sphi %s2358_s15, %s2804_s15  }
   0x8   : > { %s2383_s20 = sadd.s32 1, %s2265_s18   ;;  %s335_s21 = sadd.s32 1, %s2261_s17 }
   0x9   : > { %s332_s22 = ssub.s32 %s2265_s18, %s2383_s20  ;;  %p345_p0 = scmp.ne.s32.totalorder %s2261_s17, %s2257_s16 }
   0xa   : > { %p333_p1 = scmp.eq.s32.totalorder %s332_s22, 0  ;;  %p346_p2 = scmp.eq.s32.totalorder %s2379_s10, 1 }
   0xb   : > { %p351_p3 = scmp.ne.s32.totalorder %s2257_s16, %s2253_s15  ;;  %p352_p4 = scmp.eq.s32.totalorder %s1933_s19, 1 }
   0xc   : > { %s2394_s23 = scalar_select %p333_p1, %s2261_s17, %s335_s21  }
   0xd   : > { %p2396_p5 = por %p346_p2, %p345_p0  ;;  %p2400_p6 = por %p352_p4, %p351_p3 }
   0xe   : > { %p1936_p7 = scmp.ge.s32.totalorder %s2265_s18, 1  ;;  %p418_p8 = scmp.lt.s32.totalorder %s2265_s18, 3 }
  0x10   : > { %p419_p9 = pnand %p1936_p7, %p418_p8 }
  0x11   : > { %s1938_s26 = sshll.u32 (!%p419_p9), %s2379_s10, 2  ;;  %v2267_v1 = vmov (!%p419_p9), 0   ;;  %v479_v2 = vld [vmem:[%s2785_s4 + $0x10] sm:$0xf] (!%p419_p9)  ;;  %s2801_s0 = sld [smem:[#allocation6_spill]] (!%p419_p9)  ;;  %vm520_vm0 = vcmask (!%p419_p9), 1043456   ;;  %v655_v53 = vlaneseq (!%p419_p9) }
  0x12   : > { %422 = sbr.rel (%p419_p9) target bundleno = 1697 (0x6a1), region = 76  ;;  %p465_p10 = scmp.lt.s32.totalorder (!%p419_p9), %s1938_s26, 7  ;;  %565 = vmatprep.mubr.bf16.mxu0 (!%p419_p9), %v2267_v1  ;;  %616 = vmatprep.mubr.bf16.mxu1 (!%p419_p9), %v2267_v1  ;;  %vm513_vm1 = vcmask (!%p419_p9), 64512   ;;  %v2160_v9 = vld [vmem:[%s2784_s3] sm:$0xff] (!%p419_p9)   ;;  %vm776_vm2 = vcmask (!%p419_p9), 1041408   ;;  %vm772_vm3 = vcmask (!%p419_p9), 31744  }
  0x13   : > { %2147 = vset.pattern.permute.xlu0 (!%p419_p9), %v2267_v1  ;;  %2148 = vset.pattern.permute.xlu1 (!%p419_p9), %v2267_v1  ;;  %v2161_v12 = vld [vmem:[%s2784_s3 + $0x8] ss:$0 sps:$4 sm:$0x33] (!%p419_p9)   ;;  %v1952_v44 = vld [vmem:[%s2786_s5 + $0x2] sm:$0x3] (!%p419_p9)  ;;  %v664_v54 = vshrl.u32 (!%p419_p9), %v655_v53, 7 }
  0x14   : > { %492 = vperm.xlu0 (!%p419_p9), %2147, %v479_v2   ;;  %v1071_v45 = vld [vmem:[%s2787_s6] sm:$0xf] (!%p419_p9)  ;;  %v1092_v47 = vld [vmem:[%s2789_s8 + $0x8] sm:$0xff] (!%p419_p9)  ;;  %s2802_s1 = sld [smem:[#allocation7_spill]] (!%p419_p9)  ;;  %s2803_s2 = sld [smem:[#allocation8_spill]] (!%p419_p9)  ;;  %v656_v63 = vand.u32 (!%p419_p9), 127, %v655_v53 }
  0x15   : > { %v1091_v46 = vld [vmem:[%s2789_s8] sm:$0xff] (!%p419_p9)  ;;  %v1642_v50 = vld [vmem:[%s2793_s12 + $0x8] sm:$0xff] (!%p419_p9)  ;;  %v669_v57 = vsub.s32 (!%p419_p9), 2, %v664_v54  ;;  %v673_v58 = vsub.s32 (!%p419_p9), 4, %v664_v54  ;;  %v2485_v60 = vsub.s32 (!%p419_p9), 0, %v664_v54  ;;  %v677_v61 = vsub.s32 (!%p419_p9), 6, %v664_v54 }
  0x16   : > { %v1554_v48 = vld [vmem:[#allocation2] sm:$0x1] (!%p419_p9)  ;;  %v478_v52 = vld [vmem:[%s2785_s4 + $0x8] sm:$0xff] (!%p419_p9)  ;;  %vm657_vm4 = vcmp.lt.s32.totalorder (!%p419_p9), %v656_v63, 1  ;;  %vm719_vm5 = vcmp.lt.s32.totalorder (!%p419_p9), %v656_v63, 127  ;;  %vm2271_vm6 = vmmov (!%p419_p9), 0  }
  0x17   : > { %v1641_v49 = vld [vmem:[%s2793_s12] sm:$0xff] (!%p419_p9)  ;;  %vm1564_vm7 = vcmask (!%p419_p9), 130048   ;;  %vm1653_vm8 = vcmask (!%p419_p9), 7168   ;;  %vm1660_vm9 = vcmask (!%p419_p9), 1040384   ;;  %s461_s30 = sand.u32 (!%p419_p9), 1, %s2257_s16   ;;  %s2030_s27 = sshll.u32 (!%p419_p9), %s2379_s10, 8 }
  0x18   : > { %v477_v51 = vld [vmem:[%s2785_s4] sm:$0xff] (!%p419_p9)  ;;  %s1937_s19 = sshll.u32 (!%p419_p9), %s461_s30, 5  ;;  %s2276_s10 = smov (!%p419_p9), [#allocation3]  }
  0x19   : > { %s2809_s26 = smov (!%p465_p10, %s1938_s26), 7  ;;  %v1961_v63 = vld [vmem:[%s2786_s5 + $0x4] sm:$0x3] }
  0x1a   : > { %s1939_s29 = sshll.u32 %s2809_s26, 2  ;;  %v643_v55 = vld [vmem:[%s2802_s1] sm:$0xf]  ;;  %s2740_s1 = scalar_lea.sflag [#allocation4], %s461_s30 }
  0x1b   : > { %s468_s21 = scalar_lea.vmem %s2801_s0, %s1939_s29  ;;  %s2268_s29 = smov 1   ;;  %v644_v56 = vunpack.c.l.bf16 %v643_v55  ;;  %v645_v59 = vld [vmem:[%s2803_s2] sm:$0xf] }
  0x1c   : > { %v472_v3 = vld [vmem:[%s468_s21] sm:$0xff]  ;;  %v473_v4 = vld [vmem:[%s468_s21 + $0x8] sm:$0xff]  ;;  %s2269_s21 = smov 127   ;;  %v646_v62 = vunpack.c.l.bf16 %v645_v59 }
  0x1d   : > { %v1943_v5 = vcombine.high %v472_v3, %v472_v3  ;;  %v1945_v6 = vcombine.high %v473_v4, %v473_v4  ;;  %v1942_v7 = vcombine.low %v472_v3, %v472_v3  ;;  %v1944_v8 = vcombine.low %v473_v4, %v473_v4 }
  0x1e   : > { %v670_v0 = vrot.slane %v644_v56, %v669_v57  ;;  %v674_v2 = vrot.slane %v644_v56, %v673_v58  ;;  %v666_v3 = vrot.slane %v644_v56, %v2485_v60  ;;  %v678_v4 = vrot.slane %v644_v56, %v677_v61 }
  0x1f   : > { %1946 = vmatprep.subr.msk.bf16.mxu0 %vm520_vm0, %v1943_v5  ;;  %1949 = vmatprep.subr.msk.bf16.mxu1 %vm520_vm0, %v1945_v6  ;;  %v522_v10 = vsel %vm520_vm0, %v1942_v7, 0  ;;  %v528_v11 = vsel %vm520_vm0, %v1944_v8, 0  ;;  %v728_v7 = vrot.slane %v646_v62, %v2485_v60 }
  0x20   : > { %534 = vmatpush1.bf16.msra.mxu0 %v522_v10  ;;  %585 = vmatpush1.bf16.msra.mxu1 %v528_v11  ;;  %v690_v8 = vrot.slane %v670_v0, %v2485_v60  ;;  %v686_v10 = vrot.slane %v666_v3, %v2485_v60  ;;  %v698_v11 = vrot.slane %v678_v4, %v2485_v60 }
  0x23   : > { %1947 = vmatmul.mubr.msk.bf16.vlgmr.msra.gmra.mrb[0].mxu0 %vm513_vm1, %v2160_v9  ;;  %1950 = vmatmul.mubr.msk.bf16.vlgmr.msra.gmra.mrb[0].mxu1 %vm513_vm1, %v2160_v9  ;;  %v694_v9 = vrot.slane %v674_v2, %v2485_v60 }
  0x24   : > { %575 = vmatprep.mubr.bf16.mxu0 %v2267_v1  ;;  %626 = vmatprep.mubr.bf16.mxu1 %v2267_v1 }
  0x2b   : > { %1948 = vmatmul.mubr.msk.bf16.gmra.mrb[4].mxu0 %vm513_vm1, %v2161_v12  ;;  %1951 = vmatmul.mubr.msk.bf16.gmra.mrb[4].mxu1 %vm513_vm1, %v2161_v12 }
  0x2c   : > { %821 = vmatprep.mubr.bf16.mxu0 %v2267_v1  ;;  %862 = vmatprep.mubr.bf16.mxu1 %v2267_v1 }
  0x93   : > { %v493_v21 = vpop.permute.xlu0 %492 }
  0xf6   : > { %v2431_v13 = vpop.f32.mrb[0].mxu0  ;;  %v2433_v14 = vpop.f32.mrb[0].mxu1 }
  0xf7   : > { %v2435_v15 = vpop.f32.mrb[1].mxu0  ;;  %v2437_v16 = vpop.f32.mrb[1].mxu1 }
  0xf8   : > { %v2439_v17 = vpop.f32.mrb[2].mxu0  ;;  %v2441_v18 = vpop.f32.mrb[2].mxu1 }
  0xf9   : > { %v2443_v19 = vpop.f32.mrb[3].mxu0  ;;  %v2445_v20 = vpop.f32.mrb[3].mxu1 }
  0xfe   : > { %v577_v22 = vpop.f32.mrb[4].mxu0  ;;  %v628_v23 = vpop.f32.mrb[4].mxu1 }
  0xff   : > { %v578_v24 = vadd.f32 %v577_v22, %v493_v21  ;;  %v629_v25 = vadd.f32 %v628_v23, %v493_v21  ;;  %v579_v26 = vpop.f32.mrb[5].mxu0  ;;  %v630_v27 = vpop.f32.mrb[5].mxu1 }
 0x100   : > { %v580_v28 = vadd.f32 %v579_v26, %v493_v21  ;;  %v631_v29 = vadd.f32 %v630_v27, %v493_v21  ;;  %v581_v30 = vpop.f32.mrb[6].mxu0  ;;  %v632_v31 = vpop.f32.mrb[6].mxu1 }
 0x101   : > { %v639_v32 = vmax.f32 %v578_v24, 0.0  ;;  %v641_v33 = vmax.f32 %v629_v25, 0.0  ;;  %v582_v34 = vpop.f32.mrb[7].mxu0  ;;  %v633_v35 = vpop.f32.mrb[7].mxu1  ;;  %v748_v24 = vrot.slane %v728_v7, %v2485_v60  ;;  %v732_v25 = vrot.slane %v646_v62, %v669_v57 }
 0x102   : > { %v640_v36 = vmax.f32 %v580_v28, 0.0  ;;  %v642_v37 = vmax.f32 %v631_v29, 0.0 }
 0x103   : > { %651 = vrot.lane.b32.xlu1 %v641_v33, %s2268_s29  ;;  %647 = vrot.lane.b32.xlu0 %v639_v32, %s2268_s29  ;;  %v709_v38 = vpack.c.bf16 %v641_v33, %v641_v33  ;;  %v707_v39 = vpack.c.bf16 %v639_v32, %v639_v32 }
 0x104   : > { %v708_v40 = vpack.c.bf16 %v640_v36, %v640_v36  ;;  %v710_v41 = vpack.c.bf16 %v642_v37, %v642_v37 }
 0x105   : > { %v784_v42 = vsel %vm776_vm2, %v709_v38, 0  ;;  %v778_v43 = vsel %vm776_vm2, %v707_v39, 0 }
 0x106   : > { %1953 = vmatprep.subr.msk.bf16.mxu0 %vm776_vm2, %v708_v40  ;;  %1955 = vmatprep.subr.msk.bf16.mxu1 %vm776_vm2, %v710_v41 }
 0x107   : > { %831 = vmatpush1.bf16.msra.mxu1 %v784_v42  ;;  %649 = vrot.lane.b32.xlu1 %v640_v36, %s2268_s29  ;;  %v752_v42 = vrot.slane %v732_v25, %v2485_v60 }
 0x108   : > { %653 = vrot.lane.b32.xlu0 %v642_v37, %s2268_s29  ;;  %790 = vmatpush1.bf16.msra.mxu0 %v778_v43  ;;  %s2735_s29 = scalar_lea.hbm %s2795_s14, %s2030_s27 }
 0x10a   : > { %1956 = vmatmul.mubr.msk.bf16.vlgmr.msra.gmra.mrb[8].mxu1 %vm772_vm3, %v1952_v44 }
 0x10b   : > { %711 = vrot.lane.b32.xlu1 %v639_v32, %s2269_s21  ;;  %1954 = vmatmul.mubr.msk.bf16.vlgmr.msra.gmra.mrb[8].mxu0 %vm772_vm3, %v1952_v44  ;;  %v736_v32 = vrot.slane %v646_v62, %v673_v58 }
 0x10c   : > { %713 = vrot.lane.b32.xlu0 %v640_v36, %s2269_s21  ;;  %918 = vmatprep.mubr.bf16.mxu0 %v2267_v1 }
 0x10d   : > { %959 = vmatprep.mubr.bf16.mxu1 %v2267_v1 }
 0x10f   : > { %715 = vrot.lane.b32.xlu1 %v641_v33, %s2269_s21  ;;  %v740_v33 = vrot.slane %v646_v62, %v677_v61 }
 0x110   : > { %717 = vrot.lane.b32.xlu0 %v642_v37, %s2269_s21  ;;  %s2711_s21 = scalar_lea.vmem [#allocation3], %s1937_s19  ;;  %s2207_s19 = sshll.u32 %s2276_s10, 4  ;;  %s2208_s19 = int_to_ptr.vmem [resolvable:$false] %s2207_s19 }
 0x111   : > { %s1871_s22 = sshll.u32 %s2711_s21, 4  ;;  %s2209_s2 = scalar_lea.vmem %s2208_s19, 1024  ;;  %s2730_s22 = int_to_ptr.vmem [resolvable:$true] %s1871_s22 }
 0x112   : > { %s2203_s0 = scalar_lea.vmem %s2730_s22, 512  ;;  %p2210_p0 = scmp.lt.s32.totalorder %s2730_s22, %s2208_s19 }
 0x113   : > { %1074 = vperm.xlu1 %2148, %v1071_v45   ;;  %v756_v45 = vrot.slane %v736_v32, %v2485_v60  ;;  %p2204_p11 = scmp.ne.s32.totalorder %s2730_s22, %s2203_s0  ;;  %p2211_p1 = scmp.lt.s32.totalorder %s2209_s2, %s2203_s0 }
 0x114   : > { %1095 = vperm.xlu0 %2147, %v1091_v46   ;;  %v760_v46 = vrot.slane %v740_v33, %v2485_v60 }
 0x115   : > { %p2205_p12 = pnand %p2204_p11, %p2396_p5  ;;  %p2212_p2 = por %p2211_p1, %p2210_p0 }
 0x117   : > { %1100 = vperm.xlu1 %2148, %v1092_v47   ;;  %p2206_p13 = pneg %p2205_p12 }
 0x118   : > { %1557 = vperm.xlu0 %2147, %v1554_v48   ;;  %v769_v48 = vld [vmem:[%s2786_s5] sm:$0x3] }
 0x119   : > { %p2213_p3 = pnand %p2212_p2, %p2206_p13 }
 0x11b   : > { %1645 = vperm.xlu1 %2148, %v1641_v49  }
 0x11c   : > { %1650 = vperm.xlu0 %2147, %v1642_v50  }
 0x11f   : > { %482 = vperm.xlu1 %2148, %v477_v51  }
 0x120   : > { %487 = vperm.xlu0 %2147, %v478_v52  }
 0x175   : > { %v652_v5 = vpop.permute.xlu1 %651  ;;  %v648_v6 = vpop.permute.xlu0 %647 }
 0x179   : > { %v650_v12 = vpop.permute.xlu1 %649 }
 0x17a   : > { %v659_v21 = vsel %vm657_vm4, %v650_v12, %v652_v5  ;;  %v660_v22 = vsel %vm657_vm4, %v648_v6, %v650_v12  ;;  %v654_v23 = vpop.permute.xlu0 %653 }
 0x17b   : > { %v700_v26 = vmul.f32 %v690_v8, %v660_v22  ;;  %v701_v27 = vmul.f32 %v694_v9, %v659_v21  ;;  %v658_v28 = vsel %vm657_vm4, %v652_v5, %v654_v23  ;;  %v661_v29 = vsel %vm657_vm4, %v654_v23, %v648_v6 }
 0x17c   : > { %v699_v30 = vmul.f32 %v686_v10, %v661_v29  ;;  %v702_v31 = vmul.f32 %v698_v11, %v658_v28 }
 0x17d   : > { %v704_v34 = vpack.c.bf16 %v700_v26, %v700_v26  ;;  %v705_v35 = vpack.c.bf16 %v701_v27, %v701_v27  ;;  %v712_v36 = vpop.permute.xlu1 %711 }
 0x17e   : > { %v703_v37 = vpack.c.bf16 %v699_v30, %v699_v30  ;;  %v706_v38 = vpack.c.bf16 %v702_v31, %v702_v31  ;;  %v714_v39 = vpop.permute.xlu0 %713 }
 0x17f   : > { %v722_v40 = vsel %vm719_vm5, %v712_v36, %v714_v39  ;;  %1957 = vmatprep.subr.msk.bf16.mxu0 %vm776_vm2, %v704_v34  ;;  %v881_v41 = vsel %vm776_vm2, %v705_v35, 0 }
 0x180   : > { %v761_v43 = vmul.f32 %v748_v24, %v722_v40  ;;  %1959 = vmatprep.subr.msk.bf16.mxu1 %vm776_vm2, %v706_v38  ;;  %v875_v44 = vsel %vm776_vm2, %v703_v37, 0 }
 0x181   : > { %887 = vmatpush1.bf16.msra.mxu0 %v875_v44  ;;  %928 = vmatpush1.bf16.msra.mxu1 %v881_v41  ;;  %v716_v47 = vpop.permute.xlu1 %715 }
 0x182   : > { %v721_v49 = vsel %vm719_vm5, %v714_v39, %v716_v47  ;;  %v718_v50 = vpop.permute.xlu0 %717  ;;  %v765_v51 = vpack.c.bf16 %v761_v43, %v761_v43 }
 0x183   : > { %v762_v52 = vmul.f32 %v752_v42, %v721_v49  ;;  %v720_v53 = vsel %vm719_vm5, %v716_v47, %v718_v50  ;;  %v723_v54 = vsel %vm719_vm5, %v718_v50, %v712_v36 }
 0x184   : > { %v763_v55 = vmul.f32 %v756_v45, %v720_v53  ;;  %v764_v56 = vmul.f32 %v760_v46, %v723_v54  ;;  %1958 = vmatmul.mubr.msk.bf16.vlgmr.msra.gmra.mrb[12].mxu0 %vm772_vm3, %v769_v48  ;;  %1960 = vmatmul.mubr.msk.bf16.vlgmr.msra.gmra.mrb[12].mxu1 %vm772_vm3, %v769_v48  ;;  %v974_v61 = vsel %vm776_vm2, %v765_v51, 0 }
 0x185   : > { %v766_v57 = vpack.c.bf16 %v762_v52, %v762_v52  ;;  %1017 = vmatprep.mubr.bf16.mxu0 %v2267_v1  ;;  %1058 = vmatprep.mubr.bf16.mxu1 %v2267_v1 }
 0x186   : > { %v767_v58 = vpack.c.bf16 %v763_v55, %v763_v55  ;;  %v768_v59 = vpack.c.bf16 %v764_v56, %v764_v56 }
 0x187   : > { %1962 = vmatprep.subr.msk.bf16.mxu0 %vm776_vm2, %v766_v57 }
 0x188   : > { %1964 = vmatprep.subr.msk.bf16.mxu1 %vm776_vm2, %v768_v59  ;;  %986 = vmatpush1.bf16.msra.mxu0 %v974_v61  ;;  %v980_v62 = vsel %vm776_vm2, %v767_v58, 0 }
 0x189   : > { %1027 = vmatpush1.bf16.msra.mxu1 %v980_v62 }
 0x18c   : > { %1963 = vmatmul.mubr.msk.bf16.vlgmr.msra.gmra.mrb[16].mxu0 %vm772_vm3, %v1961_v63  ;;  %1965 = vmatmul.mubr.msk.bf16.vlgmr.msra.gmra.mrb[16].mxu1 %vm772_vm3, %v1961_v63 }
 0x18d   : > { %1155 = vmatprep.mubr.bf16.mxu0 %v2267_v1  ;;  %1198 = vmatprep.mubr.bf16.mxu1 %v2267_v1 }
 0x192   : > { %v1075_v0 = vpop.permute.xlu1 %1074 }
 0x193   : > { %v2523_v2 = vpop.permute.xlu0 %1095 }
 0x196   : > { %v2525_v3 = vpop.permute.xlu1 %1100 }
 0x197   : > { %v2527_v4 = vpop.permute.xlu0 %1557 }
 0x19a   : > { %v2529_v5 = vpop.permute.xlu1 %1645 }
 0x19b   : > { %v2531_v6 = vpop.permute.xlu0 %1650 }
 0x19e   : > { %v483_v7 = vpop.permute.xlu1 %482 }
 0x19f   : > { %v568_v8 = vadd.f32 %v2431_v13, %v483_v7  ;;  %v570_v9 = vadd.f32 %v2435_v15, %v483_v7  ;;  %v619_v10 = vadd.f32 %v2433_v14, %v483_v7  ;;  %v621_v11 = vadd.f32 %v2437_v16, %v483_v7  ;;  %v488_v12 = vpop.permute.xlu0 %487 }
 0x1a0   : > { %v572_v21 = vadd.f32 %v2439_v17, %v488_v12  ;;  %v574_v22 = vadd.f32 %v2443_v19, %v488_v12  ;;  %v623_v23 = vadd.f32 %v2441_v18, %v488_v12  ;;  %v625_v24 = vadd.f32 %v2445_v20, %v488_v12  ;;  %v2162_v12 = vld [vmem:[%s2788_s7] sm:$0xff]  }
 0x1a2   : > { %v2541_v25 = vpack.c.bf16 %v623_v23, %v619_v10  ;;  %v2543_v26 = vpack.c.bf16 %v572_v21, %v568_v8  ;;  %v2545_v13 = vpack.c.bf16 %v574_v22, %v570_v9  ;;  %v2547_v15 = vpack.c.bf16 %v625_v24, %v621_v11  ;;  %v2163_v9 = vld [vmem:[%s2794_s13 + $0x40] sm:$0xff]   ;;  %v2167_v23 = vld [vmem:[%s2794_s13 + $0x48] sm:$0xff]  }
 0x1a3   : > { %v2164_v10 = vld [vmem:[%s2794_s13 + $0xc0] sm:$0xff]   ;;  %v2168_v24 = vld [vmem:[%s2794_s13 + $0xc8] sm:$0xff]  }
 0x1a4   : > { %v2165_v21 = vld [vmem:[%s2794_s13] sm:$0xff]  }
 0x1a5   : > { %v2166_v22 = vld [vmem:[%s2794_s13 + $0x80] sm:$0xff]  }
 0x1dd   : > { %v864_v14 = vpop.f32.mrb[8].mxu1 }
 0x1de   : > { %v823_v27 = vpop.f32.mrb[8].mxu0  ;;  %v866_v16 = vpop.f32.mrb[9].mxu1 }
 0x1df   : > { %v825_v28 = vpop.f32.mrb[9].mxu0  ;;  %v868_v29 = vpop.f32.mrb[10].mxu1 }
 0x1e0   : > { %v827_v17 = vpop.f32.mrb[10].mxu0  ;;  %v869_v30 = vpop.f32.mrb[11].mxu1  ;;  %v2173_v29 = vld [vmem:[%s2794_s13 + $0x10] sm:$0xff]  }
 0x1e1   : > { %v828_v19 = vpop.f32.mrb[11].mxu0  ;;  %v2174_v17 = vld [vmem:[%s2794_s13 + $0x90] sm:$0xff]   ;;  %v2175_v30 = vld [vmem:[%s2794_s13 + $0x58] sm:$0xff]  }
 0x1e2   : > { %v2176_v19 = vld [vmem:[%s2794_s13 + $0xd8] sm:$0xff]  }
 0x257   : > { %v920_v31 = vpop.f32.mrb[12].mxu0  ;;  %v961_v18 = vpop.f32.mrb[12].mxu1 }
 0x258   : > { %v921_v32 = vadd.f32 %v920_v31, %v823_v27  ;;  %v962_v20 = vadd.f32 %v961_v18, %v864_v14  ;;  %v922_v33 = vpop.f32.mrb[13].mxu0  ;;  %v963_v34 = vpop.f32.mrb[13].mxu1  ;;  %v2169_v14 = vld [vmem:[%s2794_s13 + $0x8] sm:$0xff]   ;;  %v2177_v31 = vld [vmem:[%s2794_s13 + $0x18] sm:$0xff]  }
 0x259   : > { %v923_v35 = vadd.f32 %v922_v33, %v825_v28  ;;  %v964_v36 = vadd.f32 %v963_v34, %v866_v16  ;;  %v924_v37 = vpop.f32.mrb[14].mxu0  ;;  %v965_v38 = vpop.f32.mrb[14].mxu1  ;;  %v2170_v27 = vld [vmem:[%s2794_s13 + $0x88] sm:$0xff]   ;;  %v2171_v16 = vld [vmem:[%s2794_s13 + $0x50] sm:$0xff]   ;;  %v2178_v18 = vld [vmem:[%s2794_s13 + $0x98] sm:$0xff]  }
 0x25a   : > { %v925_v39 = vpop.f32.mrb[15].mxu0  ;;  %v966_v40 = vpop.f32.mrb[15].mxu1  ;;  %v2172_v28 = vld [vmem:[%s2794_s13 + $0xd0] sm:$0xff]   ;;  %v2181_v33 = vld [vmem:[%s2794_s13 + $0x20] sm:$0xff]   ;;  %v2185_v37 = vld [vmem:[%s2794_s13 + $0x28] sm:$0xff]  }
 0x25b   : > { %v2182_v34 = vld [vmem:[%s2794_s13 + $0xa0] sm:$0xff]   ;;  %v2186_v38 = vld [vmem:[%s2794_s13 + $0xa8] sm:$0xff]   ;;  %v2187_v39 = vld [vmem:[%s2794_s13 + $0x70] sm:$0xff]  }
 0x25c   : > { %v2188_v40 = vld [vmem:[%s2794_s13 + $0xf0] sm:$0xff]  }
 0x25f   : > { %v1019_v41 = vpop.f32.mrb[16].mxu0  ;;  %v1060_v42 = vpop.f32.mrb[16].mxu1 }
 0x260   : > { %v1067_v43 = vadd.f32 %v1019_v41, %v921_v32  ;;  %v1069_v44 = vadd.f32 %v1060_v42, %v962_v20  ;;  %v1021_v45 = vpop.f32.mrb[17].mxu0  ;;  %v1062_v46 = vpop.f32.mrb[17].mxu1  ;;  %v2179_v32 = vld [vmem:[%s2794_s13 + $0x60] sm:$0xff]   ;;  %v2189_v41 = vld [vmem:[%s2794_s13 + $0x30] sm:$0xff]  }
 0x261   : > { %v1068_v47 = vadd.f32 %v1021_v45, %v923_v35  ;;  %v1070_v48 = vadd.f32 %v1062_v46, %v964_v36  ;;  %v1023_v49 = vpop.f32.mrb[18].mxu0  ;;  %v1064_v50 = vpop.f32.mrb[18].mxu1  ;;  %v2180_v20 = vld [vmem:[%s2794_s13 + $0xe0] sm:$0xff]   ;;  %v2183_v35 = vld [vmem:[%s2794_s13 + $0x68] sm:$0xff]   ;;  %v2190_v42 = vld [vmem:[%s2794_s13 + $0xb0] sm:$0xff]  }
 0x262   : > { %v1077_v51 = vadd.f32 %v1075_v0, %v1067_v43  ;;  %v1079_v52 = vadd.f32 %v1075_v0, %v1069_v44  ;;  %v1024_v53 = vpop.f32.mrb[19].mxu0  ;;  %v1065_v54 = vpop.f32.mrb[19].mxu1  ;;  %v2184_v36 = vld [vmem:[%s2794_s13 + $0xe8] sm:$0xff]   ;;  %v2191_v43 = vld [vmem:[%s2794_s13 + $0x78] sm:$0xff]  }
 0x263   : > { %v1078_v55 = vadd.f32 %v1075_v0, %v1068_v47  ;;  %v1080_v56 = vadd.f32 %v1075_v0, %v1070_v48  ;;  %v2192_v44 = vld [vmem:[%s2794_s13 + $0xf8] sm:$0xff]  }
 0x264   : > { %v1081_v57 = vmax.f32 %v1077_v51, 0.0  ;;  %v1083_v58 = vmax.f32 %v1079_v52, 0.0  ;;  %v2193_v45 = vld [vmem:[%s2794_s13 + $0x38] sm:$0xff]  }
 0x265   : > { %v1082_v59 = vmax.f32 %v1078_v55, 0.0  ;;  %v1084_v61 = vmax.f32 %v1080_v56, 0.0  ;;  %v2194_v46 = vld [vmem:[%s2794_s13 + $0xb8] sm:$0xff]  }
 0x266   : > { %v1085_v62 = vpack.c.bf16 %v1081_v57, %v1081_v57  ;;  %v1087_v63 = vpack.c.bf16 %v1083_v58, %v1083_v58 }
 0x267   : > { %v1086_v7 = vpack.c.bf16 %v1082_v59, %v1082_v59  ;;  %v1088_v8 = vpack.c.bf16 %v1084_v61, %v1084_v61 }
 0x268   : > { %v1112_v11 = vsel %vm776_vm2, %v1085_v62, 0  ;;  %v1118_v0 = vsel %vm776_vm2, %v1087_v63, 0 }
 0x269   : > { %1967 = vmatprep.subr.msk.bf16.mxu0 %vm776_vm2, %v1086_v7  ;;  %1969 = vmatprep.subr.msk.bf16.mxu1 %vm776_vm2, %v1088_v8 }
 0x26a   : > { %1124 = vmatpush1.bf16.msra.mxu0 %v1112_v11  ;;  %1167 = vmatpush1.bf16.msra.mxu1 %v1118_v0 }
 0x26b   : > { %2031 = vmatprep.subr.bf16.mxu0 %v2163_v9  ;;  %2053 = vmatprep.subr.bf16.mxu1 %v2164_v10 }
 0x26d   : > { %1968 = vmatmul.mubr.msk.bf16.vlgmr.msra.gmra.mrb[20].mxu0 %vm772_vm3, %v2162_v12  ;;  %1970 = vmatmul.mubr.msk.bf16.vlgmr.msra.gmra.mrb[20].mxu1 %vm772_vm3, %v2162_v12 }
 0x26e   : > { %2032 = vmatpush3.bf16.msra.mxu0 %v2165_v21  ;;  %2054 = vmatpush3.bf16.msra.mxu1 %v2166_v22 }
 0x26f   : > { %2033 = vmatprep.subr.bf16.mxu0 %v2167_v23  ;;  %2055 = vmatprep.subr.bf16.mxu1 %v2168_v24 }
 0x272   : > { %2034 = vmatpush3.bf16.msra.mxu0 %v2169_v14  ;;  %2056 = vmatpush3.bf16.msra.mxu1 %v2170_v27 }
 0x273   : > { %2035 = vmatprep.subr.bf16.mxu0 %v2171_v16  ;;  %2057 = vmatprep.subr.bf16.mxu1 %v2172_v28 }
 0x276   : > { %2036 = vmatpush3.bf16.msra.mxu0 %v2173_v29  ;;  %2058 = vmatpush3.bf16.msra.mxu1 %v2174_v17 }
 0x277   : > { %2037 = vmatprep.subr.bf16.mxu0 %v2175_v30  ;;  %2059 = vmatprep.subr.bf16.mxu1 %v2176_v19 }
 0x27a   : > { %2038 = vmatpush3.bf16.msra.mxu0 %v2177_v31  ;;  %2060 = vmatpush3.bf16.msra.mxu1 %v2178_v18 }
 0x27b   : > { %2039 = vmatprep.subr.bf16.mxu0 %v2179_v32  ;;  %2061 = vmatprep.subr.bf16.mxu1 %v2180_v20  ;;  %v1553_v32 = vld [vmem:[%s2790_s9] sm:$0x1] }
 0x27c   : > { %v1639_v20 = vld [vmem:[%s2792_s11] sm:$0xff] }
 0x27e   : > { %2040 = vmatpush3.bf16.msra.mxu0 %v2181_v33  ;;  %2062 = vmatpush3.bf16.msra.mxu1 %v2182_v34  ;;  %v1563_v33 = vrot.slane %v2527_v4, %v2485_v60 }
 0x27f   : > { %2041 = vmatprep.subr.bf16.mxu0 %v2183_v35  ;;  %2063 = vmatprep.subr.bf16.mxu1 %v2184_v36 }
 0x282   : > { %2042 = vmatpush3.bf16.msra.mxu0 %v2185_v37  ;;  %2064 = vmatpush3.bf16.msra.mxu1 %v2186_v38  ;;  %v1640_v38 = vld [vmem:[%s2792_s11 + $0x8] sm:$0xff] }
 0x283   : > { %2043 = vmatprep.subr.bf16.mxu0 %v2187_v39  ;;  %2065 = vmatprep.subr.bf16.mxu1 %v2188_v40  ;;  %v2273_v39 = vmov 2  }
 0x284   : > { %2150 = vset.pattern.permute.xlu1 %v2273_v39 }
 0x286   : > { %2044 = vmatpush3.bf16.msra.mxu0 %v2189_v41  ;;  %2066 = vmatpush3.bf16.msra.mxu1 %v2190_v42 }
 0x287   : > { %2045 = vmatprep.subr.bf16.mxu0 %v2191_v43  ;;  %2067 = vmatprep.subr.bf16.mxu1 %v2192_v44 }
 0x28a   : > { %2046 = vmatpush3.bf16.msra.mxu0 %v2193_v45  ;;  %2068 = vmatpush3.bf16.msra.mxu1 %v2194_v46 }
 0x340   : > { %v1157_v47 = vpop.f32.mrb[20].mxu0  ;;  %v1200_v48 = vpop.f32.mrb[20].mxu1 }
 0x341   : > { %v1159_v49 = vpop.f32.mrb[21].mxu0  ;;  %v1202_v50 = vpop.f32.mrb[21].mxu1  ;;  %v2673_v62 = vadd.f32 %v1157_v47, %v2523_v2  ;;  %v2676_v63 = vadd.f32 %v1200_v48, %v2523_v2 }
 0x342   : > { %v1161_v51 = vpop.f32.mrb[22].mxu0  ;;  %v1204_v52 = vpop.f32.mrb[22].mxu1  ;;  %v2661_v57 = vadd.f32 %v1159_v49, %v2523_v2  ;;  %v2664_v58 = vadd.f32 %v1202_v50, %v2523_v2  ;;  %v2272_v2 = vmov 0.0  }
 0x343   : > { %v2655_v53 = vadd.f32 %v1161_v51, %v2525_v3  ;;  %v2658_v54 = vadd.f32 %v1204_v52, %v2525_v3  ;;  %v1163_v55 = vpop.f32.mrb[23].mxu0  ;;  %v1206_v56 = vpop.f32.mrb[23].mxu1  ;;  %v1816_v52 = vunpack.c.h.bf16 %v2541_v25 }
 0x344   : > { %v2667_v59 = vadd.f32 %v1163_v55, %v2525_v3  ;;  %v2670_v61 = vadd.f32 %v1206_v56, %v2525_v3  ;;  %v2270_v3 = vmov 0.0|0.0   ;;  %v1764_v55 = vunpack.c.h.bf16 %v2543_v26 }
 0x345   : > { %v1209_v9 = vpack.c.bf16 %v2655_v53, %v2673_v62  ;;  %v1211_v10 = vpack.c.bf16 %v2658_v54, %v2676_v63  ;;  %2093 = vmatprep.subr.bf16.mxu0 %v2270_v3 }
 0x346   : > { %v1210_v7 = vpack.c.bf16 %v2667_v59, %v2661_v57  ;;  %v1212_v8 = vpack.c.bf16 %v2670_v61, %v2664_v58 }
 0x348   : > { %1501 = vmatprep.mubr.bf16.mxu0 %v1210_v7  ;;  %1542 = vmatprep.mubr.bf16.mxu1 %v1212_v8 }
 0x349   : > { %1502 = vmatmul.mubr.bf16.vlgmr.msra.gmra.mrb[24].mxu0 %v1209_v9  ;;  %1543 = vmatmul.mubr.bf16.vlgmr.msra.gmra.mrb[24].mxu1 %v1211_v10 }
 0x34a   : > { %2085 = vmatprep.mubr.msk.f32.mxu0 %vm2271_vm6, %v2272_v2  ;;  %2090 = vmatprep.mubr.msk.f32.mxu1 %vm1653_vm8, %v1639_v20 }
 0x41c   : > { %v2047_v11 = vpop.f32.mrb[24].mxu0  ;;  %v2069_v0 = vpop.f32.mrb[24].mxu1 }
 0x41d   : > { %v2048_v12 = vpop.f32.mrb[25].mxu0  ;;  %v2070_v21 = vpop.f32.mrb[25].mxu1 }
 0x41e   : > { %v2049_v22 = vadd.f32 %v2048_v12, %v2047_v11  ;;  %v2071_v23 = vadd.f32 %v2070_v21, %v2069_v0  ;;  %v2050_v24 = vpop.f32.mrb[26].mxu0  ;;  %v2072_v14 = vpop.f32.mrb[26].mxu1  ;;  %v1790_v11 = vunpack.c.h.bf16 %v2545_v13  ;;  %v1763_v12 = vunpack.c.l.bf16 %v2543_v26 }
 0x41f   : > { %v2051_v27 = vpop.f32.mrb[27].mxu0  ;;  %v2073_v16 = vpop.f32.mrb[27].mxu1  ;;  %v1841_v26 = vunpack.c.l.bf16 %v2547_v15 }
 0x420   : > { %v1545_v28 = vadd.f32 %v2071_v23, %v2049_v22  ;;  %v2052_v29 = vadd.f32 %v2051_v27, %v2050_v24  ;;  %v2074_v17 = vadd.f32 %v2073_v16, %v2072_v14  ;;  %v1789_v16 = vunpack.c.l.bf16 %v2545_v13 }
 0x422   : > { %v1548_v30 = vadd.f32 %v2074_v17, %v2052_v29  ;;  %v1551_v19 = vmul.f32 0.0078125, %v1545_v28 }
 0x424   : > { %v1552_v31 = vmul.f32 0.0078125, %v1548_v30 }
 0x426   : > { %v2094_v18 = vpack.c.bf16 %v1552_v31, %v1551_v19 }
 0x428   : > { %2095 = vmatpush3.bf16.msra.mxu0 %v2094_v18 }
 0x42b   : > { %2086 = vmatmul.mubr.msk.f32.vlgmr.msra.gmra.mrb[28].mxu0 %vm1564_vm7, %v1553_v32 }
 0x4fe   : > { %v1634_v34 = vpop.f32.mrb[28].mxu0 }
 0x4ff   : > { %v1635_v35 = vadd.f32 %v1634_v34, %v1563_v33  ;;  %v2087_v36 = vpop.f32.mrb[29].mxu0 }
 0x500   : > { %v1842_v36 = vunpack.c.h.bf16 %v2547_v15 }
 0x501   : > { %v1638_v37 = vmax.f32 %v1635_v35, 0.0 }
 0x503   : > { %2088 = vmatprep.subr.msk.mxu1 %vm1660_vm9, %v1638_v37 }
 0x504   : > { %2089 = vmatpush3.msk.msra.mxu1 %vm1660_vm9, %v1638_v37 }
 0x505   : > { %2091 = vmatmul.mubr.msk.f32.vlgmr.msra.gmra.mrb[28].mxu1 %vm1653_vm8, %v1640_v38 }
 0x5d8   : > { %v2092_v40 = vpop.f32.mrb[28].mxu1 }
 0x5d9   : > { %v1736_v41 = vadd.f32 %v2092_v40, %v2531_v6  ;;  %v1730_v42 = vpop.f32.mrb[29].mxu1  ;;  %v2274_v6 = vmov 1  }
 0x5da   : > { %v1731_v60 = vadd.f32 %v1730_v42, %v2529_v5  ;;  %v2275_v5 = vmov 3  }
 0x5db   : > { %v2008_v4 = vmul.f32 -1.442695, %v1736_v41 }
 0x5dc   : > { %v2007_v43 = vmul.f32 -1.442695, %v1731_v60 }
 0x5dd   : > { %2195 = vpow2.f32 %v2008_v4 }
 0x5de   : > { %2197 = vpow2.f32 %v2007_v43 }
 0x5e7   : > { %v2196_v44 = vpop.eup %2195 }
 0x5e8   : > { %v2198_v45 = vpop.eup %2197  ;;  %v1746_v46 = vadd.f32 1.0, %v2196_v44 }
 0x5e9   : > { %v1745_v47 = vadd.f32 1.0, %v2198_v45 }
 0x5ea   : > { %2199 = vrcp.f32 %v1746_v46 }
 0x5eb   : > { %2201 = vrcp.f32 %v1745_v47 }
 0x5f4   : > { %v2200_v48 = vpop.eup %2199 }
 0x5f5   : > { %1810 = vperm.xlu1 %2150, %v2200_v48   ;;  %1758 = vperm.xlu0 %2147, %v2200_v48   ;;  %v2202_v49 = vpop.eup %2201 }
 0x5f9   : > { %2151 = vset.pattern.permute.xlu1 %v2267_v1  ;;  %2149 = vset.pattern.permute.xlu0 %v2274_v6 }
 0x5fa   : > { %1784 = vperm.xlu0 %2149, %v2200_v48   ;;  %1753 = vperm.xlu1 %2151, %v2202_v49  }
 0x5fe   : > { %2154 = vset.pattern.permute.xlu0 %v2275_v5  ;;  %2152 = vset.pattern.permute.xlu1 %v2274_v6 }
 0x5ff   : > { %1832 = vperm.xlu0 %2154, %v2202_v49   ;;  %1780 = vperm.xlu1 %2152, %v2202_v49  }
 0x603   : > { %2153 = vset.pattern.permute.xlu1 %v2273_v39 }
 0x604   : > { %1806 = vperm.xlu1 %2153, %v2202_v49  }
 0x608   : > { %2155 = vset.pattern.permute.xlu1 %v2275_v5 }
 0x609   : > { %1836 = vperm.xlu1 %2155, %v2200_v48  }
 0x674   : > { %v1811_v50 = vpop.permute.xlu1 %1810  ;;  %v1759_v51 = vpop.permute.xlu0 %1758 }
 0x675   : > { %v1814_v1 = vmul.f32 %v1811_v50, %v2658_v54  ;;  %v1762_v56 = vmul.f32 %v1759_v51, %v2655_v53 }
 0x677   : > { %v1818_v7 = vadd.f32 %v1816_v52, %v1814_v1  ;;  %v1766_v8 = vadd.f32 %v1764_v55, %v1762_v56 }
 0x679   : > { %v1820_v9 = vmax.f32 %v1818_v7, 0.0  ;;  %v1768_v10 = vmax.f32 %v1766_v8, 0.0  ;;  %v1785_v3 = vpop.permute.xlu0 %1784  ;;  %v1754_v2 = vpop.permute.xlu1 %1753 }
 0x67a   : > { %v1788_v0 = vmul.f32 %v1785_v3, %v2667_v59  ;;  %v1761_v54 = vmul.f32 %v1754_v2, %v2673_v62 }
 0x67b   : > { %v2027_v21 = vpack.c.bf16 %v1820_v9, %v1820_v9  ;;  %v2023_v22 = vpack.c.bf16 %v1768_v10, %v1768_v10 }
 0x67c   : > { %v1792_v23 = vadd.f32 %v1790_v11, %v1788_v0  ;;  %v1765_v53 = vadd.f32 %v1763_v12, %v1761_v54 }
 0x67d   : > { %1830 = vst [vmem:[%s2711_s21 + $0x18] sm:$0xf] %v2027_v21  ;;  %1778 = vst [vmem:[%s2711_s21 + $0x10] sm:$0xf] %v2023_v22 }
 0x67e   : > { %v1794_v24 = vmax.f32 %v1792_v23, 0.0  ;;  %v1767_v14 = vmax.f32 %v1765_v53, 0.0  ;;  %v1833_v27 = vpop.permute.xlu0 %1832  ;;  %v1781_v59 = vpop.permute.xlu1 %1780 }
 0x67f   : > { %v1839_v62 = vmul.f32 %v1833_v27, %v2664_v58  ;;  %v1787_v28 = vmul.f32 %v1781_v59, %v2661_v57  ;;  %v1815_v58 = vunpack.c.l.bf16 %v2541_v25 }
 0x680   : > { %v2025_v29 = vpack.c.bf16 %v1794_v24, %v1794_v24  ;;  %v2022_v17 = vpack.c.bf16 %v1767_v14, %v1767_v14 }
 0x681   : > { %v1843_v30 = vadd.f32 %v1841_v26, %v1839_v62  ;;  %v1791_v19 = vadd.f32 %v1789_v16, %v1787_v28 }
 0x682   : > { %1804 = vst [vmem:[%s2711_s21 + $0x14] sm:$0xf] %v2025_v29  ;;  %1777 = vst [vmem:[%s2711_s21] sm:$0xf] %v2022_v17 }
 0x683   : > { %v1845_v31 = vmax.f32 %v1843_v30, 0.0  ;;  %v1793_v18 = vmax.f32 %v1791_v19, 0.0  ;;  %v1807_v32 = vpop.permute.xlu1 %1806 }
 0x684   : > { %v1813_v13 = vmul.f32 %v1807_v32, %v2676_v63 }
 0x685   : > { %v2028_v20 = vpack.c.bf16 %v1845_v31, %v1845_v31  ;;  %v2024_v33 = vpack.c.bf16 %v1793_v18, %v1793_v18 }
 0x686   : > { %v1817_v57 = vadd.f32 %v1815_v58, %v1813_v13 }
 0x687   : > { %1855 = vst [vmem:[%s2711_s21 + $0xc] sm:$0xf] %v2028_v20  ;;  %1803 = vst [vmem:[%s2711_s21 + $0x4] sm:$0xf] %v2024_v33 }
 0x688   : > { %v1819_v34 = vmax.f32 %v1817_v57, 0.0  ;;  %v1837_v35 = vpop.permute.xlu1 %1836 }
 0x689   : > { %v1840_v37 = vmul.f32 %v1837_v35, %v2670_v61 }
 0x68a   : > { %v2026_v38 = vpack.c.bf16 %v1819_v34, %v1819_v34 }
 0x68b   : > { %v1844_v39 = vadd.f32 %v1842_v36, %v1840_v37 }
 0x68c   : > { %1829 = vst [vmem:[%s2711_s21 + $0x8] sm:$0xf] %v2026_v38 }
 0x68d   : > { %v1846_v25 = vmax.f32 %v1844_v39, 0.0 }
 0x68f   : > { %v2029_v63 = vpack.c.bf16 %v1846_v25, %v1846_v25 }
 0x691   : > { %1856 = vst [vmem:[%s2711_s21 + $0x1c] sm:$0xf] %v2029_v63 }
 0x692   : > { %2216 = shalt.err (!%p2213_p3)
}
 0x693   : > { %s2217_s30 = scalar_lea.hbm %s2735_s29, 512  ;;  %s2221_s26 = scalar_lea.hbm %s2795_s14, 1024 }
 0x694   : > { %p2218_p4 = scmp.ne.s32.totalorder %s2735_s29, %s2217_s30  ;;  %p2222_p9 = scmp.lt.u32.totalorder %s2735_s29, %s2795_s14 }
 0x695   : > { %p2223_p10 = scmp.lt.u32.totalorder %s2221_s26, %s2217_s30  ;;  %p2225_p12 = scmp.lt.u32.totalorder %s2217_s30, %s2735_s29 }
 0x696   : > { %p2219_p7 = pnand %p2218_p4, %p2396_p5 }
 0x697   : > { %p2224_p11 = por %p2223_p10, %p2222_p9 }
 0x698   : > { %p2220_p8 = pneg %p2219_p7 }
 0x699   : > { %p2226_p13 = por %p2225_p12, %p2224_p11 }
 0x69b   : > { %p2227_p0 = pnand %p2226_p13, %p2220_p8 }
 0x69d   : > { %2230 = shalt.err (!%p2227_p0)
}
 0x69e   : > { %s2277_s2 = smov 256   ;;  %s2278_s0 = smov 512  }
 0x69f   : > { %s2279_s19 = smov 16  }
 0x6a0   : > { %2096 = dma.vmem_to_hbm [thread:$0]  (%p2396_p5), %s2730_s22, 512, %s2735_s29, %s2740_s1, %s2277_s2, %s2278_s0, %s2279_s19  }
 0x6a1 PF: > { %p2102_p1 = scmp.ge.s32.totalorder %s2265_s18, 2  ;;  %s1886_s21 = sand.u32 1, %s2253_s15  }
 0x6a2   : > { %s1887_s30 = scalar_lea.sflag [#allocation4], %s1886_s21 }
 0x6a3   : > { %p2099_p2 = pnand %p2102_p1, %p2400_p6 }
 0x6a5   : > { %2248 = dma.done.wait (!%p2099_p2), %s1887_s30, 512  }
 0x6a6   : > { %2250 = vsyncadd (!%p2099_p2), %s1887_s30, 4294966784  ;;  %p26_p3 = scmp.ge.s32.totalorder %s2383_s20, 4   ;;  %s2804_s15 = smov %s2257_s16 }
 0x6a7   : > { %s2805_s16 = smov %s2261_s17  ;;  %s2806_s17 = smov %s2394_s23 }
 0x6a8   : > { %s2807_s18 = smov %s2383_s20  ;;  %28 = sbr.rel (!%p26_p3) target bundleno = 7 (0x7), region = 113 }
 0x6af   :  { %1892 = vsyncpa [#allocation4], 1 }
 0x6b0   :  { %1894 = vsyncpa [#allocation4 + $0x1], 1 }

</bundles_post_ra>
